<compile_context>
chip_gen: v7x
topology: tpu7x:2x2x1
jax: 0.10.0
libtpu: 0.0.40
codegen_flags: <defaults>
</compile_context>

<pallas_src>
import functools
import math

import jax
import jax.numpy as jnp
from jax.experimental import pallas as pl
from jax.experimental.pallas import tpu as pltpu


def _memory_wise_kernel(x_ref, ft_ref, cam_ref, idx_ref, camb_ref,   # inputs
                        o_ref,                                        # output (SMEM (3,))
                        xn_ref, sim_ref, intra_ref,                   # resident scratch
                        mI_ref, seI_ref, nnI_ref,                     # intra running stats
                        mX_ref, seX_ref, nnX_ref,                     # inter running stats
                        *, temp, neighbor_eps, n_valid):
    j = pl.program_id(0)
    n_tiles = sim_ref.shape[0]
    B = x_ref.shape[0]
    NT = ft_ref.shape[0]

    inv_temp = jnp.float32(1.0 / temp)
    eps = jnp.float32(neighbor_eps)
    neg_big = jnp.float32(-1e30)

    # ---- once: L2-normalize inputs (F.normalize dim=1, eps=1e-12), cast once
    #      to the bank dtype for the MXU, init running stats --------------------
    @pl.when(j == 0)
    def _init():
        x = x_ref[...].astype(jnp.float32)
        nrm = jnp.sqrt(jnp.sum(x * x, axis=1, keepdims=True))
        xn_ref[...] = (x / jnp.maximum(nrm, 1e-12)).astype(xn_ref.dtype)
        for r in (mI_ref, mX_ref, nnI_ref, nnX_ref):
            r[...] = jnp.full_like(r, neg_big)
        seI_ref[...] = jnp.zeros_like(seI_ref)
        seX_ref[...] = jnp.zeros_like(seX_ref)

    # ---- streamed MXU matmul against the current bank tile (no transpose, no
    #      per-tile dtype cast): sim_tile = xn @ bank_tile.T, f32 accumulation --
    sim = jax.lax.dot_general(
        xn_ref[...], ft_ref[...],
        dimension_numbers=(((1,), (1,)), ((), ())),
        preferred_element_type=jnp.float32)                       # (B, NT)
    sim_ref[j] = sim

    # ---- per-tile masks (padded columns: cam id = -1 and col >= n_valid) ------
    col = j * NT + jax.lax.broadcasted_iota(jnp.int32, (1, NT), 1)
    valid = (col < n_valid).astype(jnp.float32)                   # (1, NT)
    m_intra = (cam_ref[...] == camb_ref[...]).astype(jnp.float32)  # (B, NT)
    m_inter = valid - m_intra
    m_inst = (col == idx_ref[...]).astype(jnp.float32)            # (B, NT)
    intra_ref[j] = m_intra

    # ---- online statistics: the scan is DMA-bound, so these VPU/EUP/XLU ops
    #      are free filler. Running neighbor max + online (rescaled) sum-exp of
    #      the masked logits (torch keeps masked logits at 0, not -inf). -------
    def update_stats(mask, nb_mask, m_ref, se_ref, nn_ref):
        logits = sim * inv_temp * mask
        m_old = m_ref[...]
        m_new = jnp.maximum(m_old, jnp.max(logits, axis=1, keepdims=True))
        se_ref[...] = (se_ref[...] * jnp.exp(m_old - m_new) +
                       jnp.sum(jnp.exp(logits - m_new) * valid,
                               axis=1, keepdims=True))
        m_ref[...] = m_new
        sim_m = (sim + 1.0) * nb_mask - 1.0
        nn_ref[...] = jnp.maximum(nn_ref[...],
                                  jnp.max(sim_m, axis=1, keepdims=True))

    update_stats(m_intra, m_intra * (1.0 - m_inst), mI_ref, seI_ref, nnI_ref)
    update_stats(m_inter, m_inter, mX_ref, seX_ref, nnX_ref)

    # ---- finalize: neighbor selection + masked log-softmax losses. One pass
    #      over the resident sim tiles, only (B, NT) temporaries alive. --------
    @pl.when(j == n_tiles - 1)
    def _finalize():
        log_clamp = jnp.float32(math.log(1e-8))
        lse_i = mI_ref[...] + jnp.log(seI_ref[...])               # (B, 1)
        lse_x = mX_ref[...] + jnp.log(seX_ref[...])
        thr_i = nnI_ref[...] * eps
        thr_x = nnX_ref[...] * eps
        idx_v = idx_ref[...]

        def body(t, carry):
            ins, num_i, cnt_i, num_x, cnt_x = carry
            s = sim_ref[t]                                        # (B, NT)
            mi = intra_ref[t]
            colc = t * NT + jax.lax.broadcasted_iota(jnp.int32, (1, NT), 1)
            vld = (colc < n_valid).astype(jnp.float32)
            inst = (colc == idx_v).astype(jnp.float32)
            mx = vld - mi

            # intra branch: logscore = log(clamp_min(softmax(logits), 1e-8))
            nb_i = ((s + 1.0) * (mi * (1.0 - inst)) - 1.0 > thr_i
                    ).astype(jnp.float32)
            ls_i = jnp.maximum(s * inv_temp * mi - lse_i, log_clamp)
            ins = ins + jnp.sum(ls_i * inst, axis=1, keepdims=True)
            num_i = num_i + jnp.sum(ls_i * nb_i, axis=1, keepdims=True)
            cnt_i = cnt_i + jnp.sum(nb_i, axis=1, keepdims=True)

            # inter branch
            nb_x = ((s + 1.0) * mx - 1.0 > thr_x).astype(jnp.float32)
            ls_x = jnp.maximum(s * inv_temp * mx - lse_x, log_clamp)
            num_x = num_x + jnp.sum(ls_x * nb_x, axis=1, keepdims=True)
            cnt_x = cnt_x + jnp.sum(nb_x, axis=1, keepdims=True)
            return ins, num_i, cnt_i, num_x, cnt_x

        zero = jnp.zeros((B, 1), jnp.float32)
        ins, num_i, cnt_i, num_x, cnt_x = jax.lax.fori_loop(
            0, n_tiles, body, (zero, zero, zero, zero, zero))

        inv_b = jnp.float32(1.0 / B)
        o_ref[0] = -jnp.sum(ins) * inv_b
        o_ref[1] = -jnp.sum(num_i / (cnt_i + 1.0)) * inv_b
        o_ref[2] = -jnp.sum(num_x / (cnt_x + 1.0)) * inv_b * jnp.float32(0.6)


def _round_up(x, m):
    return ((x + m - 1) // m) * m


def memory_wise_forward(inputs, features, cam_mem, indexes, cameras, *,
                        temp=0.05, neighbor_eps=0.9, n_tile=None,
                        bank_dtype=jnp.bfloat16, vmem_cap_bytes=None):
    """Memory_wise.forward.

    inputs: (B, D) f32; features: (N, D) memory bank (converted to `bank_dtype`
    by default -> bf16 MXU matmul with f32 accumulation; pass bank_dtype=None to
    keep f32); cam_mem: (N,) int camera id per bank row; indexes/cameras: (B,).
    Returns (ins_loss.mean(), intra_loss.mean(), inter_loss.mean() * 0.6).
    Amortization tip: the N*D bank scan cost is independent of B, so stack
    mini-batches to B = 64..256 per call when possible.
    """
    B, D = inputs.shape
    N, Df = features.shape
    assert D == Df
    bank = features if bank_dtype is None else features.astype(bank_dtype)
    itemsize = jnp.dtype(bank.dtype).itemsize

    # Generation-aware scoped-VMEM cap (never hard-code 64 MiB: that is the
    # entire physical VMEM of a v7x TensorCore). ~30% headroom for compiler
    # internal scratch and the double buffers.
    if vmem_cap_bytes is None:
        phys = 64 * 1024 * 1024                       # v7x-safe fallback
        try:
            phys = int(pltpu.get_tpu_info().vmem_capacity_bytes)
        except Exception:
            pass
        vmem_cap_bytes = int(phys * 0.70)

    d_pad = _round_up(D, 128)
    b_pad = _round_up(max(B, 8), 8)
    n128 = _round_up(N, 128)
    margin = 2 * 1024 * 1024
    # Resident / grid-invariant VMEM (sim + intra-mask scratch dominate).
    fixed = (2 * 4 * b_pad * n128                 # sim_ref + intra_ref (f32)
             + 2 * b_pad * d_pad * 4              # inputs block (double-buffered)
             + b_pad * d_pad * itemsize           # normalized-inputs scratch
             + 64 * 1024)                         # idx / cam / stat blocks
    if n_tile is None:
        budget = vmem_cap_bytes - fixed - margin
        per128 = 128 * 2 * d_pad * itemsize + 2 * 8 * 128 * 4
        units = max(int(budget // per128), 1)
        n_tile = 128 * min(units, max(n128 // 128, 1), 32)   # soft cap 4096 rows
    assert n_tile > 0 and n_tile % 128 == 0, n_tile

    # Pad the bank up to a tile multiple; padded rows are zero features with
    # camera id -1 and are masked in-kernel via `col < N`.
    n_pad = _round_up(N, n_tile)
    n_tiles = n_pad // n_tile
    if n_pad != N:
        bank = jnp.concatenate(
            [bank, jnp.zeros((n_pad - N, D), bank.dtype)], axis=0)
        cam_pad = jnp.concatenate(
            [cam_mem.astype(jnp.int32),
             jnp.full((n_pad - N,), -1, jnp.int32)], axis=0)
    else:
        cam_pad = cam_mem.astype(jnp.int32)
    cam_pad = cam_pad.reshape(1, n_pad)
    idx_b = indexes.astype(jnp.int32).reshape(B, 1)
    camb = cameras.astype(jnp.int32).reshape(B, 1)

    need = (fixed
            + 2 * n_tile * d_pad * itemsize        # double-buffered bank tiles
            + 2 * 8 * n_tile * 4                   # double-buffered cam tiles
            + 2 * 4 * b_pad * (n_pad - n128)       # scratch growth from padding
            + margin)
    vmem_limit = int(max(need, 8 * 1024 * 1024))

    kernel = functools.partial(_memory_wise_kernel, temp=float(temp),
                               neighbor_eps=float(neighbor_eps), n_valid=int(N))

    grid_spec = pltpu.PrefetchScalarGridSpec(
        num_scalar_prefetch=0,
        grid=(n_tiles,),
        in_specs=[
            pl.BlockSpec((B, D), lambda j: (0, 0)),           # inputs (resident)
            pl.BlockSpec((n_tile, D), lambda j: (j, 0)),      # streamed bank tile
            pl.BlockSpec((1, n_tile), lambda j: (0, j)),      # streamed bank cam ids
            pl.BlockSpec((B, 1), lambda j: (0, 0)),           # indexes
            pl.BlockSpec((B, 1), lambda j: (0, 0)),           # batch cameras
        ],
        out_specs=pl.BlockSpec(memory_space=pltpu.MemorySpace.SMEM),
        scratch_shapes=[
            pltpu.VMEM((B, D), bank.dtype),                   # normalized inputs
            pltpu.VMEM((n_tiles, B, n_tile), jnp.float32),    # resident sim
            pltpu.VMEM((n_tiles, B, n_tile), jnp.float32),    # resident intra mask
            pltpu.VMEM((B, 1), jnp.float32),                  # m_intra (LSE max)
            pltpu.VMEM((B, 1), jnp.float32),                  # sumexp_intra
            pltpu.VMEM((B, 1), jnp.float32),                  # nearest_intra
            pltpu.VMEM((B, 1), jnp.float32),                  # m_inter
            pltpu.VMEM((B, 1), jnp.float32),                  # sumexp_inter
            pltpu.VMEM((B, 1), jnp.float32),                  # nearest_inter
        ],
    )

    out = pl.pallas_call(
        kernel,
        out_shape=jax.ShapeDtypeStruct((3,), jnp.float32),
        grid_spec=grid_spec,
        compiler_params=pltpu.CompilerParams(
            dimension_semantics=("arbitrary",),
            vmem_limit_bytes=vmem_limit),
    )(inputs.astype(jnp.float32), bank, cam_pad, idx_b, camb)
    # TODO(synk): on v7x, shard the bank scan across the 2 TensorCores (leading
    # parallel axis / pl.core_map) and combine the partial (max, sumexp,
    # nearest) stats through CMEM before the finalize pass (~2x on the scan).
    return out[0], out[1], out[2]


def _reference(inputs, features, cam_mem, indexes, cameras, temp, neighbor_eps,
               matmul_dtype=jnp.float32):
    """Pure-JAX reference mirroring the PyTorch forward."""
    x = inputs / jnp.maximum(jnp.linalg.norm(inputs, axis=1, keepdims=True), 1e-12)
    sim = jnp.dot(x.astype(matmul_dtype), features.astype(matmul_dtype).T,
                  preferred_element_type=jnp.float32).astype(jnp.float32)
    sim_exp = sim / temp
    B, N = sim.shape
    mask_instance = (jnp.arange(N)[None, :] == indexes[:, None]).astype(jnp.float32)
    mask_intra = (cam_mem[None, :] == cameras[:, None]).astype(jnp.float32)
    mask_inter = 1.0 - mask_intra

    def branch(mask, nb_mask):
        sim_m = (sim + 1.0) * nb_mask - 1.0
        nearest = sim_m.max(axis=1, keepdims=True)
        mask_nb = (sim_m > nearest * neighbor_eps).astype(jnp.float32)
        num_nb = mask_nb.sum(axis=1) + 1.0
        score = jnp.maximum(jax.nn.softmax(sim_exp * mask, axis=1), 1e-8)
        loss = -(jnp.log(score) * mask_nb).sum(axis=1) / num_nb
        return loss, score

    intra_loss, score_intra = branch(mask_intra, mask_intra * (1.0 - mask_instance))
    inter_loss, _ = branch(mask_inter, mask_inter)
    ins_loss = -jnp.log(jnp.sum(score_intra * mask_instance, axis=1))
    return ins_loss.mean(), intra_loss.mean(), inter_loss.mean() * 0.6


if __name__ == "__main__":
    key = jax.random.PRNGKey(0)
    k_in, k_feat, k_cammem, k_idx, k_cam = jax.random.split(key, 5)

    B = 8          # batch
    D = 32         # num_features
    N = 500        # num_samples: deliberately NOT a multiple of 128 (padding path)
    NUM_CAMS = 4

    # Synthetic memory bank (torch fills its zeros buffer via EM updates at
    # train time; use L2-normalized random rows so the math is non-trivial).
    features = jax.random.normal(k_feat, (N, D), dtype=jnp.float32)
    features = features / jnp.linalg.norm(features, axis=1, keepdims=True)
    cam_mem = jax.random.randint(k_cammem, (N,), 0, NUM_CAMS, dtype=jnp.int32)

    inputs = jax.random.normal(k_in, (B, D), dtype=jnp.float32)
    indexes = jax.random.randint(k_idx, (B,), 0, N, dtype=jnp.int32)
    cameras = jax.random.randint(k_cam, (B,), 0, NUM_CAMS, dtype=jnp.int32)

    got = memory_wise_forward(inputs, features, cam_mem, indexes, cameras,
                              temp=0.05, neighbor_eps=0.9, n_tile=128)
    jax.block_until_ready(got)

    # Reference uses the same precision knob as the kernel (bf16 bank + bf16
    # normalized inputs, f32 accumulation) so the comparison is tight.
    ref = _reference(inputs, features, cam_mem, indexes, cameras,
                     temp=0.05, neighbor_eps=0.9, matmul_dtype=jnp.bfloat16)
    for g, r in zip(got, ref):
        assert jnp.allclose(g, r, rtol=5e-2, atol=5e-2), (float(g), float(r))

    print("KERNEL_OK")
</pallas_src>

<mosaic_0001>
module attributes {stable_mosaic.version = 11 : i64} {
  func.func @_memory_wise_kernel(%arg0: i32, %arg1: memref<8x32xf32, #tpu.memory_space<vmem>>, %arg2: memref<128x32xbf16, #tpu.memory_space<vmem>>, %arg3: memref<1x128xi32, #tpu.memory_space<vmem>>, %arg4: memref<8x1xi32, #tpu.memory_space<vmem>>, %arg5: memref<8x1xi32, #tpu.memory_space<vmem>>, %arg6: memref<3xf32, #tpu.memory_space<smem>>, %arg7: memref<8x32xbf16, #tpu.memory_space<vmem>>, %arg8: memref<4x8x128xf32, #tpu.memory_space<vmem>>, %arg9: memref<4x8x128xf32, #tpu.memory_space<vmem>>, %arg10: memref<8x1xf32, #tpu.memory_space<vmem>>, %arg11: memref<8x1xf32, #tpu.memory_space<vmem>>, %arg12: memref<8x1xf32, #tpu.memory_space<vmem>>, %arg13: memref<8x1xf32, #tpu.memory_space<vmem>>, %arg14: memref<8x1xf32, #tpu.memory_space<vmem>>, %arg15: memref<8x1xf32, #tpu.memory_space<vmem>>) attributes {dimension_semantics = [#tpu.dimension_semantics<arbitrary>], iteration_bounds = array<i64: 4>, scalar_prefetch = 0 : i64, scratch_operands = 9 : i64, tpu.core_type = #tpu.core_type<tc>, window_params = [{pipeline_mode = #tpu.pipeline_mode<synchronous>, transform_indices = @transform_0, window_bounds = array<i64: 8, 32>}, {transform_indices = @transform_1, window_bounds = array<i64: 128, 32>}, {transform_indices = @transform_2, window_bounds = array<i64: 1, 128>}, {pipeline_mode = #tpu.pipeline_mode<synchronous>, transform_indices = @transform_3, window_bounds = array<i64: 8, 1>}, {pipeline_mode = #tpu.pipeline_mode<synchronous>, transform_indices = @transform_4, window_bounds = array<i64: 8, 1>}, {transform_indices = @transform_5, window_bounds = array<i64: 3>}]} {
    %c0_i32 = arith.constant 0 : i32
    %0 = arith.cmpi eq, %arg0, %c0_i32 : i32
    %1 = arith.extui %0 : i1 to i32
    %cst = arith.constant -1.000000e+30 : f32
    %c0_i32_0 = arith.constant 0 : i32
    %2 = arith.cmpi ne, %1, %c0_i32_0 : i32
    scf.if %2 {
      %c0_55 = arith.constant 0 : index
      %c0_56 = arith.constant 0 : index
      %105 = vector.load %arg1[%c0_55, %c0_56] : memref<8x32xf32, #tpu.memory_space<vmem>>, vector<8x32xf32>
      %106 = arith.mulf %105, %105 : vector<8x32xf32>
      %cst_57 = arith.constant dense<0.000000e+00> : vector<8xf32>
      %107 = vector.multi_reduction <add>, %106, %cst_57 [1] : vector<8x32xf32> to vector<8xf32>
      %108 = vector.shape_cast %107 : vector<8xf32> to vector<8x1xf32>
      %109 = math.sqrt %108 : vector<8x1xf32>
      %cst_58 = arith.constant 9.99999996E-13 : f32
      %110 = vector.broadcast %cst_58 : f32 to vector<8x1xf32>
      %111 = arith.maximumf %109, %110 : vector<8x1xf32>
      %112 = vector.broadcast %111 : vector<8x1xf32> to vector<8x32xf32>
      %113 = arith.divf %105, %112 : vector<8x32xf32>
      %114 = arith.truncf %113 : vector<8x32xf32> to vector<8x32xbf16>
      %c0_59 = arith.constant 0 : index
      %c0_60 = arith.constant 0 : index
      %115 = vector.load %arg7[%c0_59, %c0_60] : memref<8x32xbf16, #tpu.memory_space<vmem>>, vector<8x32xbf16>
      tpu.vector_store %arg7[%c0_59, %c0_60], %114 {strides = array<i32>} : memref<8x32xbf16, #tpu.memory_space<vmem>>, vector<8x32xbf16>,
      %116 = vector.broadcast %cst : f32 to vector<8x1xf32>
      %c0_61 = arith.constant 0 : index
      %c0_62 = arith.constant 0 : index
      %117 = vector.load %arg10[%c0_61, %c0_62] : memref<8x1xf32, #tpu.memory_space<vmem>>, vector<8x1xf32>
      tpu.vector_store %arg10[%c0_61, %c0_62], %116 {strides = array<i32>} : memref<8x1xf32, #tpu.memory_space<vmem>>, vector<8x1xf32>,
      %118 = vector.broadcast %cst : f32 to vector<8x1xf32>
      %c0_63 = arith.constant 0 : index
      %c0_64 = arith.constant 0 : index
      %119 = vector.load %arg13[%c0_63, %c0_64] : memref<8x1xf32, #tpu.memory_space<vmem>>, vector<8x1xf32>
      tpu.vector_store %arg13[%c0_63, %c0_64], %118 {strides = array<i32>} : memref<8x1xf32, #tpu.memory_space<vmem>>, vector<8x1xf32>,
      %120 = vector.broadcast %cst : f32 to vector<8x1xf32>
      %c0_65 = arith.constant 0 : index
      %c0_66 = arith.constant 0 : index
      %121 = vector.load %arg12[%c0_65, %c0_66] : memref<8x1xf32, #tpu.memory_space<vmem>>, vector<8x1xf32>
      tpu.vector_store %arg12[%c0_65, %c0_66], %120 {strides = array<i32>} : memref<8x1xf32, #tpu.memory_space<vmem>>, vector<8x1xf32>,
      %122 = vector.broadcast %cst : f32 to vector<8x1xf32>
      %c0_67 = arith.constant 0 : index
      %c0_68 = arith.constant 0 : index
      %123 = vector.load %arg15[%c0_67, %c0_68] : memref<8x1xf32, #tpu.memory_space<vmem>>, vector<8x1xf32>
      tpu.vector_store %arg15[%c0_67, %c0_68], %122 {strides = array<i32>} : memref<8x1xf32, #tpu.memory_space<vmem>>, vector<8x1xf32>,
      %cst_69 = arith.constant 0.000000e+00 : f32
      %124 = vector.broadcast %cst_69 : f32 to vector<8x1xf32>
      %c0_70 = arith.constant 0 : index
      %c0_71 = arith.constant 0 : index
      %125 = vector.load %arg11[%c0_70, %c0_71] : memref<8x1xf32, #tpu.memory_space<vmem>>, vector<8x1xf32>
      tpu.vector_store %arg11[%c0_70, %c0_71], %124 {strides = array<i32>} : memref<8x1xf32, #tpu.memory_space<vmem>>, vector<8x1xf32>,
      %cst_72 = arith.constant 0.000000e+00 : f32
      %126 = vector.broadcast %cst_72 : f32 to vector<8x1xf32>
      %c0_73 = arith.constant 0 : index
      %c0_74 = arith.constant 0 : index
      %127 = vector.load %arg14[%c0_73, %c0_74] : memref<8x1xf32, #tpu.memory_space<vmem>>, vector<8x1xf32>
      tpu.vector_store %arg14[%c0_73, %c0_74], %126 {strides = array<i32>} : memref<8x1xf32, #tpu.memory_space<vmem>>, vector<8x1xf32>,
    } else {
    }
    %c0 = arith.constant 0 : index
    %c0_1 = arith.constant 0 : index
    %3 = vector.load %arg7[%c0, %c0_1] : memref<8x32xbf16, #tpu.memory_space<vmem>>, vector<8x32xbf16>
    %c0_2 = arith.constant 0 : index
    %c0_3 = arith.constant 0 : index
    %4 = vector.load %arg2[%c0_2, %c0_3] : memref<128x32xbf16, #tpu.memory_space<vmem>>, vector<128x32xbf16>
    %cst_4 = arith.constant dense<0.000000e+00> : vector<8x128xf32>
    %5 = tpu.matmul %3, %4, %cst_4 {dimension_numbers = #tpu.dot_dimension_numbers<[1], [1], [0], [0], [0, 0, 1, 0], [], []>} : vector<8x32xbf16>, vector<128x32xbf16>, vector<8x128xf32> -> vector<8x128xf32>
    %6 = arith.index_cast %arg0 : i32 to index
    %c0_5 = arith.constant 0 : index
    %c0_6 = arith.constant 0 : index
    %7 = vector.load %arg8[%6, %c0_5, %c0_6] : memref<4x8x128xf32, #tpu.memory_space<vmem>>, vector<1x8x128xf32>
    %8 = vector.shape_cast %7 : vector<1x8x128xf32> to vector<8x128xf32>
    %9 = vector.shape_cast %5 : vector<8x128xf32> to vector<1x8x128xf32>
    tpu.vector_store %arg8[%6, %c0_5, %c0_6], %9 {strides = array<i32>} : memref<4x8x128xf32, #tpu.memory_space<vmem>>, vector<1x8x128xf32>,
    %c128_i32 = arith.constant 128 : i32
    %10 = arith.muli %arg0, %c128_i32 : i32
    %11 = tpu.iota {dimensions = array<i32: 1>} : vector<1x128xi32>
    %12 = vector.broadcast %10 : i32 to vector<1x128xi32>
    %13 = arith.addi %12, %11 : vector<1x128xi32>
    %c500_i32 = arith.constant 500 : i32
    %14 = vector.broadcast %c500_i32 : i32 to vector<1x128xi32>
    %15 = arith.cmpi slt, %13, %14 : vector<1x128xi32>
    %16 = arith.extui %15 : vector<1x128xi1> to vector<1x128xi32>
    %17 = arith.sitofp %16 : vector<1x128xi32> to vector<1x128xf32>
    %c0_7 = arith.constant 0 : index
    %c0_8 = arith.constant 0 : index
    %18 = vector.load %arg3[%c0_7, %c0_8] : memref<1x128xi32, #tpu.memory_space<vmem>>, vector<1x128xi32>
    %c0_9 = arith.constant 0 : index
    %c0_10 = arith.constant 0 : index
    %19 = vector.load %arg5[%c0_9, %c0_10] : memref<8x1xi32, #tpu.memory_space<vmem>>, vector<8x1xi32>
    %20 = vector.broadcast %18 : vector<1x128xi32> to vector<8x128xi32>
    %21 = vector.broadcast %19 : vector<8x1xi32> to vector<8x128xi32>
    %22 = arith.cmpi eq, %20, %21 : vector<8x128xi32>
    %23 = arith.extui %22 : vector<8x128xi1> to vector<8x128xi32>
    %24 = arith.sitofp %23 : vector<8x128xi32> to vector<8x128xf32>
    %25 = vector.broadcast %17 : vector<1x128xf32> to vector<8x128xf32>
    %26 = arith.subf %25, %24 : vector<8x128xf32>
    %c0_11 = arith.constant 0 : index
    %c0_12 = arith.constant 0 : index
    %27 = vector.load %arg4[%c0_11, %c0_12] : memref<8x1xi32, #tpu.memory_space<vmem>>, vector<8x1xi32>
    %28 = vector.broadcast %13 : vector<1x128xi32> to vector<8x128xi32>
    %29 = vector.broadcast %27 : vector<8x1xi32> to vector<8x128xi32>
    %30 = arith.cmpi eq, %28, %29 : vector<8x128xi32>
    %31 = arith.extui %30 : vector<8x128xi1> to vector<8x128xi32>
    %32 = arith.sitofp %31 : vector<8x128xi32> to vector<8x128xf32>
    %33 = arith.index_cast %arg0 : i32 to index
    %c0_13 = arith.constant 0 : index
    %c0_14 = arith.constant 0 : index
    %34 = vector.load %arg9[%33, %c0_13, %c0_14] : memref<4x8x128xf32, #tpu.memory_space<vmem>>, vector<1x8x128xf32>
    %35 = vector.shape_cast %34 : vector<1x8x128xf32> to vector<8x128xf32>
    %36 = vector.shape_cast %24 : vector<8x128xf32> to vector<1x8x128xf32>
    tpu.vector_store %arg9[%33, %c0_13, %c0_14], %36 {strides = array<i32>} : memref<4x8x128xf32, #tpu.memory_space<vmem>>, vector<1x8x128xf32>,
    %cst_15 = arith.constant 1.000000e+00 : f32
    %37 = vector.broadcast %cst_15 : f32 to vector<8x128xf32>
    %38 = arith.subf %37, %32 : vector<8x128xf32>
    %39 = arith.mulf %24, %38 : vector<8x128xf32>
    %cst_16 = arith.constant 2.000000e+01 : f32
    %40 = vector.broadcast %cst_16 : f32 to vector<8x128xf32>
    %41 = arith.mulf %5, %40 : vector<8x128xf32>
    %42 = arith.mulf %41, %24 : vector<8x128xf32>
    %c0_17 = arith.constant 0 : index
    %c0_18 = arith.constant 0 : index
    %43 = vector.load %arg10[%c0_17, %c0_18] : memref<8x1xf32, #tpu.memory_space<vmem>>, vector<8x1xf32>
    %cst_19 = arith.constant dense<0xFF800000> : vector<8xf32>
    %44 = vector.multi_reduction <maximumf>, %42, %cst_19 [1] : vector<8x128xf32> to vector<8xf32>
    %45 = vector.shape_cast %44 : vector<8xf32> to vector<8x1xf32>
    %46 = arith.maximumf %43, %45 : vector<8x1xf32>
    %c0_20 = arith.constant 0 : index
    %c0_21 = arith.constant 0 : index
    %47 = vector.load %arg11[%c0_20, %c0_21] : memref<8x1xf32, #tpu.memory_space<vmem>>, vector<8x1xf32>
    %48 = arith.subf %43, %46 : vector<8x1xf32>
    %49 = math.exp %48 : vector<8x1xf32>
    %50 = arith.mulf %47, %49 : vector<8x1xf32>
    %51 = vector.broadcast %46 : vector<8x1xf32> to vector<8x128xf32>
    %52 = arith.subf %42, %51 : vector<8x128xf32>
    %53 = math.exp %52 : vector<8x128xf32>
    %54 = vector.broadcast %17 : vector<1x128xf32> to vector<8x128xf32>
    %55 = arith.mulf %53, %54 : vector<8x128xf32>
    %cst_22 = arith.constant dense<0.000000e+00> : vector<8xf32>
    %56 = vector.multi_reduction <add>, %55, %cst_22 [1] : vector<8x128xf32> to vector<8xf32>
    %57 = vector.shape_cast %56 : vector<8xf32> to vector<8x1xf32>
    %58 = arith.addf %50, %57 : vector<8x1xf32>
    %c0_23 = arith.constant 0 : index
    %c0_24 = arith.constant 0 : index
    %59 = vector.load %arg11[%c0_23, %c0_24] : memref<8x1xf32, #tpu.memory_space<vmem>>, vector<8x1xf32>
    tpu.vector_store %arg11[%c0_23, %c0_24], %58 {strides = array<i32>} : memref<8x1xf32, #tpu.memory_space<vmem>>, vector<8x1xf32>,
    %c0_25 = arith.constant 0 : index
    %c0_26 = arith.constant 0 : index
    %60 = vector.load %arg10[%c0_25, %c0_26] : memref<8x1xf32, #tpu.memory_space<vmem>>, vector<8x1xf32>
    tpu.vector_store %arg10[%c0_25, %c0_26], %46 {strides = array<i32>} : memref<8x1xf32, #tpu.memory_space<vmem>>, vector<8x1xf32>,
    %cst_27 = arith.constant 1.000000e+00 : f32
    %61 = vector.broadcast %cst_27 : f32 to vector<8x128xf32>
    %62 = arith.addf %5, %61 : vector<8x128xf32>
    %63 = arith.mulf %62, %39 : vector<8x128xf32>
    %cst_28 = arith.constant 1.000000e+00 : f32
    %64 = vector.broadcast %cst_28 : f32 to vector<8x128xf32>
    %65 = arith.subf %63, %64 : vector<8x128xf32>
    %c0_29 = arith.constant 0 : index
    %c0_30 = arith.constant 0 : index
    %66 = vector.load %arg12[%c0_29, %c0_30] : memref<8x1xf32, #tpu.memory_space<vmem>>, vector<8x1xf32>
    %cst_31 = arith.constant dense<0xFF800000> : vector<8xf32>
    %67 = vector.multi_reduction <maximumf>, %65, %cst_31 [1] : vector<8x128xf32> to vector<8xf32>
    %68 = vector.shape_cast %67 : vector<8xf32> to vector<8x1xf32>
    %69 = arith.maximumf %66, %68 : vector<8x1xf32>
    %c0_32 = arith.constant 0 : index
    %c0_33 = arith.constant 0 : index
    %70 = vector.load %arg12[%c0_32, %c0_33] : memref<8x1xf32, #tpu.memory_space<vmem>>, vector<8x1xf32>
    tpu.vector_store %arg12[%c0_32, %c0_33], %69 {strides = array<i32>} : memref<8x1xf32, #tpu.memory_space<vmem>>, vector<8x1xf32>,
    %cst_34 = arith.constant 2.000000e+01 : f32
    %71 = vector.broadcast %cst_34 : f32 to vector<8x128xf32>
    %72 = arith.mulf %5, %71 : vector<8x128xf32>
    %73 = arith.mulf %72, %26 : vector<8x128xf32>
    %c0_35 = arith.constant 0 : index
    %c0_36 = arith.constant 0 : index
    %74 = vector.load %arg13[%c0_35, %c0_36] : memref<8x1xf32, #tpu.memory_space<vmem>>, vector<8x1xf32>
    %cst_37 = arith.constant dense<0xFF800000> : vector<8xf32>
    %75 = vector.multi_reduction <maximumf>, %73, %cst_37 [1] : vector<8x128xf32> to vector<8xf32>
    %76 = vector.shape_cast %75 : vector<8xf32> to vector<8x1xf32>
    %77 = arith.maximumf %74, %76 : vector<8x1xf32>
    %c0_38 = arith.constant 0 : index
    %c0_39 = arith.constant 0 : index
    %78 = vector.load %arg14[%c0_38, %c0_39] : memref<8x1xf32, #tpu.memory_space<vmem>>, vector<8x1xf32>
    %79 = arith.subf %74, %77 : vector<8x1xf32>
    %80 = math.exp %79 : vector<8x1xf32>
    %81 = arith.mulf %78, %80 : vector<8x1xf32>
    %82 = vector.broadcast %77 : vector<8x1xf32> to vector<8x128xf32>
    %83 = arith.subf %73, %82 : vector<8x128xf32>
    %84 = math.exp %83 : vector<8x128xf32>
    %85 = vector.broadcast %17 : vector<1x128xf32> to vector<8x128xf32>
    %86 = arith.mulf %84, %85 : vector<8x128xf32>
    %cst_40 = arith.constant dense<0.000000e+00> : vector<8xf32>
    %87 = vector.multi_reduction <add>, %86, %cst_40 [1] : vector<8x128xf32> to vector<8xf32>
    %88 = vector.shape_cast %87 : vector<8xf32> to vector<8x1xf32>
    %89 = arith.addf %81, %88 : vector<8x1xf32>
    %c0_41 = arith.constant 0 : index
    %c0_42 = arith.constant 0 : index
    %90 = vector.load %arg14[%c0_41, %c0_42] : memref<8x1xf32, #tpu.memory_space<vmem>>, vector<8x1xf32>
    tpu.vector_store %arg14[%c0_41, %c0_42], %89 {strides = array<i32>} : memref<8x1xf32, #tpu.memory_space<vmem>>, vector<8x1xf32>,
    %c0_43 = arith.constant 0 : index
    %c0_44 = arith.constant 0 : index
    %91 = vector.load %arg13[%c0_43, %c0_44] : memref<8x1xf32, #tpu.memory_space<vmem>>, vector<8x1xf32>
    tpu.vector_store %arg13[%c0_43, %c0_44], %77 {strides = array<i32>} : memref<8x1xf32, #tpu.memory_space<vmem>>, vector<8x1xf32>,
    %cst_45 = arith.constant 1.000000e+00 : f32
    %92 = vector.broadcast %cst_45 : f32 to vector<8x128xf32>
    %93 = arith.addf %5, %92 : vector<8x128xf32>
    %94 = arith.mulf %93, %26 : vector<8x128xf32>
    %cst_46 = arith.constant 1.000000e+00 : f32
    %95 = vector.broadcast %cst_46 : f32 to vector<8x128xf32>
    %96 = arith.subf %94, %95 : vector<8x128xf32>
    %c0_47 = arith.constant 0 : index
    %c0_48 = arith.constant 0 : index
    %97 = vector.load %arg15[%c0_47, %c0_48] : memref<8x1xf32, #tpu.memory_space<vmem>>, vector<8x1xf32>
    %cst_49 = arith.constant dense<0xFF800000> : vector<8xf32>
    %98 = vector.multi_reduction <maximumf>, %96, %cst_49 [1] : vector<8x128xf32> to vector<8xf32>
    %99 = vector.shape_cast %98 : vector<8xf32> to vector<8x1xf32>
    %100 = arith.maximumf %97, %99 : vector<8x1xf32>
    %c0_50 = arith.constant 0 : index
    %c0_51 = arith.constant 0 : index
    %101 = vector.load %arg15[%c0_50, %c0_51] : memref<8x1xf32, #tpu.memory_space<vmem>>, vector<8x1xf32>
    tpu.vector_store %arg15[%c0_50, %c0_51], %100 {strides = array<i32>} : memref<8x1xf32, #tpu.memory_space<vmem>>, vector<8x1xf32>,
    %c3_i32 = arith.constant 3 : i32
    %102 = arith.cmpi eq, %arg0, %c3_i32 : i32
    %103 = arith.extui %102 : i1 to i32
    %cst_52 = arith.constant 0.899999976 : f32
    %cst_53 = arith.constant 2.000000e+01 : f32
    %c0_i32_54 = arith.constant 0 : i32
    %104 = arith.cmpi ne, %103, %c0_i32_54 : i32
    scf.if %104 {
      %c0_55 = arith.constant 0 : index
      %c0_56 = arith.constant 0 : index
      %105 = vector.load %arg10[%c0_55, %c0_56] : memref<8x1xf32, #tpu.memory_space<vmem>>, vector<8x1xf32>
      %c0_57 = arith.constant 0 : index
      %c0_58 = arith.constant 0 : index
      %106 = vector.load %arg11[%c0_57, %c0_58] : memref<8x1xf32, #tpu.memory_space<vmem>>, vector<8x1xf32>
      %107 = math.log %106 : vector<8x1xf32>
      %108 = arith.addf %105, %107 : vector<8x1xf32>
      %c0_59 = arith.constant 0 : index
      %c0_60 = arith.constant 0 : index
      %109 = vector.load %arg13[%c0_59, %c0_60] : memref<8x1xf32, #tpu.memory_space<vmem>>, vector<8x1xf32>
      %c0_61 = arith.constant 0 : index
      %c0_62 = arith.constant 0 : index
      %110 = vector.load %arg14[%c0_61, %c0_62] : memref<8x1xf32, #tpu.memory_space<vmem>>, vector<8x1xf32>
      %111 = math.log %110 : vector<8x1xf32>
      %112 = arith.addf %109, %111 : vector<8x1xf32>
      %c0_63 = arith.constant 0 : index
      %c0_64 = arith.constant 0 : index
      %113 = vector.load %arg12[%c0_63, %c0_64] : memref<8x1xf32, #tpu.memory_space<vmem>>, vector<8x1xf32>
      %114 = vector.broadcast %cst_52 : f32 to vector<8x1xf32>
      %115 = arith.mulf %113, %114 : vector<8x1xf32>
      %c0_65 = arith.constant 0 : index
      %c0_66 = arith.constant 0 : index
      %116 = vector.load %arg15[%c0_65, %c0_66] : memref<8x1xf32, #tpu.memory_space<vmem>>, vector<8x1xf32>
      %117 = vector.broadcast %cst_52 : f32 to vector<8x1xf32>
      %118 = arith.mulf %116, %117 : vector<8x1xf32>
      %c0_67 = arith.constant 0 : index
      %c0_68 = arith.constant 0 : index
      %119 = vector.load %arg4[%c0_67, %c0_68] : memref<8x1xi32, #tpu.memory_space<vmem>>, vector<8x1xi32>
      %cst_69 = arith.constant 0.000000e+00 : f32
      %120 = vector.broadcast %cst_69 : f32 to vector<8x1xf32>
      %cst_70 = arith.constant -18.420681 : f32
      %c0_i32_71 = arith.constant 0 : i32
      %c4_i32 = arith.constant 4 : i32
      %121 = arith.addi %c0_i32_71, %c4_i32 : i32
      %c1_i32 = arith.constant 1 : i32
      %122:5 = scf.for %arg16 = %c0_i32_71 to %121 step %c1_i32 iter_args(%arg17 = %120, %arg18 = %120, %arg19 = %120, %arg20 = %120, %arg21 = %120) -> (vector<8x1xf32>, vector<8x1xf32>, vector<8x1xf32>, vector<8x1xf32>, vector<8x1xf32>)  : i32 {
        %151 = arith.index_cast %arg16 : i32 to index
        %c0_86 = arith.constant 0 : index
        %c0_87 = arith.constant 0 : index
        %152 = vector.load %arg8[%151, %c0_86, %c0_87] : memref<4x8x128xf32, #tpu.memory_space<vmem>>, vector<1x8x128xf32>
        %153 = vector.shape_cast %152 : vector<1x8x128xf32> to vector<8x128xf32>
        %154 = arith.index_cast %arg16 : i32 to index
        %c0_88 = arith.constant 0 : index
        %c0_89 = arith.constant 0 : index
        %155 = vector.load %arg9[%154, %c0_88, %c0_89] : memref<4x8x128xf32, #tpu.memory_space<vmem>>, vector<1x8x128xf32>
        %156 = vector.shape_cast %155 : vector<1x8x128xf32> to vector<8x128xf32>
        %c128_i32_90 = arith.constant 128 : i32
        %157 = arith.muli %arg16, %c128_i32_90 : i32
        %158 = tpu.iota {dimensions = array<i32: 1>} : vector<1x128xi32>
        %159 = vector.broadcast %157 : i32 to vector<1x128xi32>
        %160 = arith.addi %159, %158 : vector<1x128xi32>
        %c500_i32_91 = arith.constant 500 : i32
        %161 = vector.broadcast %c500_i32_91 : i32 to vector<1x128xi32>
        %162 = arith.cmpi slt, %160, %161 : vector<1x128xi32>
        %163 = arith.extui %162 : vector<1x128xi1> to vector<1x128xi32>
        %164 = arith.sitofp %163 : vector<1x128xi32> to vector<1x128xf32>
        %165 = vector.broadcast %160 : vector<1x128xi32> to vector<8x128xi32>
        %166 = vector.broadcast %119 : vector<8x1xi32> to vector<8x128xi32>
        %167 = arith.cmpi eq, %165, %166 : vector<8x128xi32>
        %168 = arith.extui %167 : vector<8x128xi1> to vector<8x128xi32>
        %169 = arith.sitofp %168 : vector<8x128xi32> to vector<8x128xf32>
        %170 = vector.broadcast %164 : vector<1x128xf32> to vector<8x128xf32>
        %171 = arith.subf %170, %156 : vector<8x128xf32>
        %cst_92 = arith.constant 1.000000e+00 : f32
        %172 = vector.broadcast %cst_92 : f32 to vector<8x128xf32>
        %173 = arith.addf %153, %172 : vector<8x128xf32>
        %cst_93 = arith.constant 1.000000e+00 : f32
        %174 = vector.broadcast %cst_93 : f32 to vector<8x128xf32>
        %175 = arith.subf %174, %169 : vector<8x128xf32>
        %176 = arith.mulf %156, %175 : vector<8x128xf32>
        %177 = arith.mulf %173, %176 : vector<8x128xf32>
        %cst_94 = arith.constant 1.000000e+00 : f32
        %178 = vector.broadcast %cst_94 : f32 to vector<8x128xf32>
        %179 = arith.subf %177, %178 : vector<8x128xf32>
        %180 = vector.broadcast %115 : vector<8x1xf32> to vector<8x128xf32>
        %181 = arith.cmpf ogt, %179, %180 : vector<8x128xf32>
        %182 = arith.extui %181 : vector<8x128xi1> to vector<8x128xi32>
        %183 = arith.sitofp %182 : vector<8x128xi32> to vector<8x128xf32>
        %184 = vector.broadcast %cst_53 : f32 to vector<8x128xf32>
        %185 = arith.mulf %153, %184 : vector<8x128xf32>
        %186 = arith.mulf %185, %156 : vector<8x128xf32>
        %187 = vector.broadcast %108 : vector<8x1xf32> to vector<8x128xf32>
        %188 = arith.subf %186, %187 : vector<8x128xf32>
        %189 = vector.broadcast %cst_70 : f32 to vector<8x128xf32>
        %190 = arith.maximumf %188, %189 : vector<8x128xf32>
        %191 = arith.mulf %190, %169 : vector<8x128xf32>
        %cst_95 = arith.constant dense<0.000000e+00> : vector<8xf32>
        %192 = vector.multi_reduction <add>, %191, %cst_95 [1] : vector<8x128xf32> to vector<8xf32>
        %193 = vector.shape_cast %192 : vector<8xf32> to vector<8x1xf32>
        %194 = arith.addf %arg17, %193 : vector<8x1xf32>
        %195 = arith.mulf %190, %183 : vector<8x128xf32>
        %cst_96 = arith.constant dense<0.000000e+00> : vector<8xf32>
        %196 = vector.multi_reduction <add>, %195, %cst_96 [1] : vector<8x128xf32> to vector<8xf32>
        %197 = vector.shape_cast %196 : vector<8xf32> to vector<8x1xf32>
        %198 = arith.addf %arg18, %197 : vector<8x1xf32>
        %cst_97 = arith.constant dense<0.000000e+00> : vector<8xf32>
        %199 = vector.multi_reduction <add>, %183, %cst_97 [1] : vector<8x128xf32> to vector<8xf32>
        %200 = vector.shape_cast %199 : vector<8xf32> to vector<8x1xf32>
        %201 = arith.addf %arg19, %200 : vector<8x1xf32>
        %cst_98 = arith.constant 1.000000e+00 : f32
        %202 = vector.broadcast %cst_98 : f32 to vector<8x128xf32>
        %203 = arith.addf %153, %202 : vector<8x128xf32>
        %204 = arith.mulf %203, %171 : vector<8x128xf32>
        %cst_99 = arith.constant 1.000000e+00 : f32
        %205 = vector.broadcast %cst_99 : f32 to vector<8x128xf32>
        %206 = arith.subf %204, %205 : vector<8x128xf32>
        %207 = vector.broadcast %118 : vector<8x1xf32> to vector<8x128xf32>
        %208 = arith.cmpf ogt, %206, %207 : vector<8x128xf32>
        %209 = arith.extui %208 : vector<8x128xi1> to vector<8x128xi32>
        %210 = arith.sitofp %209 : vector<8x128xi32> to vector<8x128xf32>
        %211 = vector.broadcast %cst_53 : f32 to vector<8x128xf32>
        %212 = arith.mulf %153, %211 : vector<8x128xf32>
        %213 = arith.mulf %212, %171 : vector<8x128xf32>
        %214 = vector.broadcast %112 : vector<8x1xf32> to vector<8x128xf32>
        %215 = arith.subf %213, %214 : vector<8x128xf32>
        %216 = vector.broadcast %cst_70 : f32 to vector<8x128xf32>
        %217 = arith.maximumf %215, %216 : vector<8x128xf32>
        %218 = arith.mulf %217, %210 : vector<8x128xf32>
        %cst_100 = arith.constant dense<0.000000e+00> : vector<8xf32>
        %219 = vector.multi_reduction <add>, %218, %cst_100 [1] : vector<8x128xf32> to vector<8xf32>
        %220 = vector.shape_cast %219 : vector<8xf32> to vector<8x1xf32>
        %221 = arith.addf %arg20, %220 : vector<8x1xf32>
        %cst_101 = arith.constant dense<0.000000e+00> : vector<8xf32>
        %222 = vector.multi_reduction <add>, %210, %cst_101 [1] : vector<8x128xf32> to vector<8xf32>
        %223 = vector.shape_cast %222 : vector<8xf32> to vector<8x1xf32>
        %224 = arith.addf %arg21, %223 : vector<8x1xf32>
        scf.yield %194, %198, %201, %221, %224 : vector<8x1xf32>, vector<8x1xf32>, vector<8x1xf32>, vector<8x1xf32>, vector<8x1xf32>
      }
      %c4_i32_72 = arith.constant 4 : i32
      %123 = vector.shape_cast %122#0 : vector<8x1xf32> to vector<1x8x1xf32>
      %cst_73 = arith.constant dense<0.000000e+00> : vector<1xf32>
      %124 = vector.multi_reduction <add>, %123, %cst_73 [1, 2] : vector<1x8x1xf32> to vector<1xf32>
      %125 = vector.shape_cast %124 : vector<1xf32> to vector<1x1x1xf32>
      %126 = vector.extract %125[0, 0, 0] : f32 from vector<1x1x1xf32>
      %cst_74 = arith.constant 0.000000e+00 : f32
      %127 = arith.subf %cst_74, %126 : f32
      %cst_75 = arith.constant 1.250000e-01 : f32
      %128 = arith.mulf %127, %cst_75 : f32
      %c0_76 = arith.constant 0 : index
      %129 = memref.load %arg6[%c0_76] : memref<3xf32, #tpu.memory_space<smem>>
      memref.store %128, %arg6[%c0_76] : memref<3xf32, #tpu.memory_space<smem>>
      %cst_77 = arith.constant 1.000000e+00 : f32
      %130 = vector.broadcast %cst_77 : f32 to vector<8x1xf32>
      %131 = arith.addf %122#2, %130 : vector<8x1xf32>
      %132 = arith.divf %122#1, %131 : vector<8x1xf32>
      %133 = vector.shape_cast %132 : vector<8x1xf32> to vector<1x8x1xf32>
      %cst_78 = arith.constant dense<0.000000e+00> : vector<1xf32>
      %134 = vector.multi_reduction <add>, %133, %cst_78 [1, 2] : vector<1x8x1xf32> to vector<1xf32>
      %135 = vector.shape_cast %134 : vector<1xf32> to vector<1x1x1xf32>
      %136 = vector.extract %135[0, 0, 0] : f32 from vector<1x1x1xf32>
      %cst_79 = arith.constant 0.000000e+00 : f32
      %137 = arith.subf %cst_79, %136 : f32
      %cst_80 = arith.constant 1.250000e-01 : f32
      %138 = arith.mulf %137, %cst_80 : f32
      %c1 = arith.constant 1 : index
      %139 = memref.load %arg6[%c1] : memref<3xf32, #tpu.memory_space<smem>>
      memref.store %138, %arg6[%c1] : memref<3xf32, #tpu.memory_space<smem>>
      %cst_81 = arith.constant 1.000000e+00 : f32
      %140 = vector.broadcast %cst_81 : f32 to vector<8x1xf32>
      %141 = arith.addf %122#4, %140 : vector<8x1xf32>
      %142 = arith.divf %122#3, %141 : vector<8x1xf32>
      %143 = vector.shape_cast %142 : vector<8x1xf32> to vector<1x8x1xf32>
      %cst_82 = arith.constant dense<0.000000e+00> : vector<1xf32>
      %144 = vector.multi_reduction <add>, %143, %cst_82 [1, 2] : vector<1x8x1xf32> to vector<1xf32>
      %145 = vector.shape_cast %144 : vector<1xf32> to vector<1x1x1xf32>
      %146 = vector.extract %145[0, 0, 0] : f32 from vector<1x1x1xf32>
      %cst_83 = arith.constant 0.000000e+00 : f32
      %147 = arith.subf %cst_83, %146 : f32
      %cst_84 = arith.constant 1.250000e-01 : f32
      %148 = arith.mulf %147, %cst_84 : f32
      %cst_85 = arith.constant 6.000000e-01 : f32
      %149 = arith.mulf %148, %cst_85 : f32
      %c2 = arith.constant 2 : index
      %150 = memref.load %arg6[%c2] : memref<3xf32, #tpu.memory_space<smem>>
      memref.store %149, %arg6[%c2] : memref<3xf32, #tpu.memory_space<smem>>
    } else {
    }
    return
  }
  func.func @transform_0(%arg0: i32) -> (i32, i32) {
    %c0_i32 = arith.constant 0 : i32
    %c0_i32_0 = arith.constant 0 : i32
    %c0_i32_1 = arith.constant 0 : i32
    return %c0_i32, %c0_i32_0 : i32, i32
  }
  func.func @transform_1(%arg0: i32) -> (i32, i32) {
    %c0_i32 = arith.constant 0 : i32
    %c0_i32_0 = arith.constant 0 : i32
    return %arg0, %c0_i32 : i32, i32
  }
  func.func @transform_2(%arg0: i32) -> (i32, i32) {
    %c0_i32 = arith.constant 0 : i32
    %c0_i32_0 = arith.constant 0 : i32
    return %c0_i32, %arg0 : i32, i32
  }
  func.func @transform_3(%arg0: i32) -> (i32, i32) {
    %c0_i32 = arith.constant 0 : i32
    %c0_i32_0 = arith.constant 0 : i32
    %c0_i32_1 = arith.constant 0 : i32
    return %c0_i32, %c0_i32_0 : i32, i32
  }
  func.func @transform_4(%arg0: i32) -> (i32, i32) {
    %c0_i32 = arith.constant 0 : i32
    %c0_i32_0 = arith.constant 0 : i32
    %c0_i32_1 = arith.constant 0 : i32
    return %c0_i32, %c0_i32_0 : i32, i32
  }
  func.func @transform_5(%arg0: i32) -> i32 {
    %c0_i32 = arith.constant 0 : i32
    %c0_i32_0 = arith.constant 0 : i32
    return %c0_i32 : i32
  }
}

</mosaic_0001>

<bundles_post_ra>
// kernel: tpu_custom_call.1
= control target key start
LH: loop header
LB: loop body
LE: loop exit
PB: predicated region body
PF: predicated region fallthrough
CT: control target
= control target key end

     0   :  { %10 = vsyncpa [#allocation12], 0  ;;  %s1004_s18 = smov 0   ;;  %s1166_s0 = inlined_call_operand.vmem [shape: f32[8,32], index: 0, kind: input, shape index: {}]   ;;  %s1167_s1 = inlined_call_operand.vmem [shape: bf16[512,32], index: 1, kind: input, shape index: {}]   ;;  %s1168_s2 = inlined_call_operand.vmem [shape: s32[1,512], index: 2, kind: input, shape index: {}]   ;;  %s1169_s3 = inlined_call_operand.vmem [shape: s32[8,1], index: 3, kind: input, shape index: {}]   ;;  %s1170_s4 = inlined_call_operand.vmem [shape: s32[8,1], index: 4, kind: input, shape index: {}]   ;;  %s1171_s5 = inlined_call_operand.hbm [shape: f32[3], index: 5, kind: output, shape index: {}]  }
   0x1 LB: > { %s1010_s19 = sadd.s32 4294967295, %s940_s18   ;;  %p723_p0 = scmp.ge.s32.totalorder %s940_s18, 1  ;;  %s940_s18 = sphi %s1004_s18, %s16_s18  }
   0x2   : > { %p192_p1 = scmp.lt.s32.totalorder %s940_s18, 5 }
   0x4   : > { %p193_p2 = pnand %p723_p0, %p192_p1 }
   0x5   : > { %s724_s20 = sshll.u32 (!%p193_p2), %s1010_s19, 4  ;;  %p224_p3 = scmp.lt.s32.totalorder (!%p193_p2), %s1010_s19, 3 }
   0x6   : > { %196 = sbr.rel (%p193_p2) target bundleno = 1473 (0x5c1), region = 40  ;;  %p219_p4 = scmp.lt.s32.totalorder (!%p193_p2), %s724_s20, 63 }
   0x7   : > { %p726_p5 = scmp.ne.s32.totalorder (!%p193_p2), %s1010_s19, 0 }
   0xd   : > { %s1017_s21 = scalar_select %p224_p3, %s1010_s19, 3 }
   0xe   : > { %s1178_s20 = smov (!%p219_p4, %s724_s20), 63  ;;  %231 = sbr.rel (%p726_p5) target bundleno = 194 (0xc2), region = 44 }
   0xf   : > { %s226_s24 = scalar_lea.vmem %s1168_s2, %s1017_s21  ;;  %s725_s25 = sshll.u32 %s1178_s20, 2  ;;  %v232_v0 = vld [vmem:[%s1166_s0] sm:$0xff] (!%p726_p5)  ;;  %vm234_vm0 = vcmask (!%p726_p5), 261120   ;;  %vm251_vm1 = vcmask (!%p726_p5), 7168   ;;  %v966_v3 = vmov (!%p726_p5), -1e+30  }
  0x10   : > { %s1026_s28 = scalar_lea.vmem %s1167_s1, %s725_s25  ;;  %v233_v1 = vmul.f32 (!%p726_p5), %v232_v0, %v232_v0  ;;  %252 = vst.msk [vmem:[#allocation5] sm:$0xff] (!%p726_p5), %vm251_vm1, %v966_v3  ;;  %253 = vst.msk [vmem:[#allocation8] sm:$0xff] (!%p726_p5), %vm251_vm1, %v966_v3  ;;  %v967_v4 = vmov (!%p726_p5), 0.0   ;;  %vm249_vm4 = vcmask (!%p726_p5), 257024  }
  0x11   : > { %254 = vst.msk [vmem:[#allocation7] sm:$0xff] (!%p726_p5), %vm251_vm1, %v966_v3  ;;  %255 = vst.msk [vmem:[#allocation10] sm:$0xff] (!%p726_p5), %vm251_vm1, %v966_v3 }
  0x12   : > { %v235_v2 = vsel (!%p726_p5), %vm234_vm0, %v233_v1, 0.0  ;;  %256 = vst.msk [vmem:[#allocation6] sm:$0xff] (!%p726_p5), %vm251_vm1, %v967_v4  ;;  %257 = vst.msk [vmem:[#allocation9] sm:$0xff] (!%p726_p5), %vm251_vm1, %v967_v4 }
  0x13   : > { %236 = vadd.xlane.f32.xlu0 (!%p726_p5), %v235_v2 }
  0xa0   : > { %v237_v5 = vpop.xlane.xlu0 %236 }
  0xa1   : > { %862 = vrsqrt.f32 %v237_v5  ;;  %vm240_vm2 = vcmp.eq.f32.partialorder %v237_v5, inf  ;;  %v243_v8 = vand.u32 2147483648, %v237_v5  ;;  %vm242_vm3 = vcmp.eq.f32.partialorder %v237_v5, 0.0 }
  0xab   : > { %v863_v6 = vpop.eup %862 }
  0xac   : > { %v239_v7 = vmul.f32 %v863_v6, %v237_v5 }
  0xae   : > { %v241_v9 = vsel %vm240_vm2, %v237_v5, %v239_v7 }
  0xaf   : > { %v244_v10 = vsel %vm242_vm3, %v243_v8, %v241_v9 }
  0xb0   : > { %v245_v11 = vmax.f32 %v244_v10, 1e-12 }
  0xb2   : > { %864 = vrcp.f32 %v245_v11 }
  0xbc   : > { %v865_v12 = vpop.eup %864 }
  0xbd   : > { %v247_v13 = vmul.f32 %v865_v12, %v232_v0 }
  0xbf   : > { %v248_v14 = vpack.c.bf16 %v247_v13, %v247_v13 }
  0xc1   : > { %250 = vst.msk [vmem:[#allocation2] sm:$0xf] %vm249_vm4, %v248_v14 }
  0xc2 PF: > { %v868_v15 = vld [vmem:[%s1026_s28] sm:$0xff]   ;;  %v968_v16 = vmov 0.0   ;;  %vm315_vm5 = vcmask 261120   ;;  %v869_v18 = vld [vmem:[%s1026_s28 + $0x8] sm:$0xff]   ;;  %vm969_vm6 = vmmov 0   ;;  %v970_v21 = vmov 0  }
  0xc3   : > { %766 = vmatprep.subr.bf16.mxu0 %v968_v16  ;;  %v320_v17 = vsel %vm315_vm5, %v868_v15, 0  ;;  %v323_v19 = vsel %vm315_vm5, %v869_v18, 0  ;;  %v395_v20 = vld [vmem:[%s1170_s4] sm:$0xff]  ;;  %782 = vmatprep.mubr.msk.bf16.mxu0 %vm969_vm6, %v968_v16  ;;  %v870_v22 = vld [vmem:[%s1026_s28 + $0x10] sm:$0xff]   ;;  %v871_v24 = vld [vmem:[%s1026_s28 + $0x18] sm:$0xff]   ;;  %s736_s10 = sshll.u32 %s1010_s19, 3  ;;  %v387_v38 = vlaneseq }
  0xc4   : > { %767 = vmatpush3.bf16.xpose.msra.mxu0 %v320_v17  ;;  %866 = vset.pattern.permute.xlu0 %v970_v21  ;;  %v326_v23 = vsel %vm315_vm5, %v870_v22, 0  ;;  %v329_v25 = vsel %vm315_vm5, %v871_v24, 0  ;;  %v872_v26 = vld [vmem:[%s1026_s28 + $0x20] sm:$0xff]   ;;  %v873_v28 = vld [vmem:[%s1026_s28 + $0x28] sm:$0xff]   ;;  %v874_v30 = vld [vmem:[%s1026_s28 + $0x30] sm:$0xff]   ;;  %s414_s11 = scalar_lea.vmem [#allocation4], %s736_s10 }
  0xc5   : > { %768 = vmatprep.subr.bf16.mxu0 %v968_v16  ;;  %401 = vperm.xlu0 %866, %v395_v20   ;;  %v332_v27 = vsel %vm315_vm5, %v872_v26, 0  ;;  %v335_v29 = vsel %vm315_vm5, %v873_v28, 0  ;;  %v338_v31 = vsel %vm315_vm5, %v874_v30, 0  ;;  %v875_v32 = vld [vmem:[%s1026_s28 + $0x38] sm:$0xff]   ;;  %v739_v35 = vld [vmem:[%s226_s24] ss:$0 sm:$0xff] }
  0xc6   : > { %867 = vset.pattern.permute.xlu1 %v970_v21  ;;  %v341_v33 = vsel %vm315_vm5, %v875_v32, 0  ;;  %s737_s12 = sshll.u32 %s1010_s19, 7  ;;  %v1069_v39 = vand.u32 127, %v387_v38  ;;  %s384_s13 = scalar_lea.vmem [#allocation3], %s736_s10  ;;  %v453_v53 = vld [vmem:[#allocation8] sm:$0xff]  ;;  %v420_v54 = vld [vmem:[#allocation5] sm:$0xff] }
  0xc7   : > { %v389_v40 = vstv %s737_s12  ;;  %vm441_vm9 = vcmask 7168   ;;  %v407_v61 = vld [vmem:[%s1169_s3] sm:$0xff]  ;;  %v447_v20 = vld [vmem:[#allocation7] sm:$0xff]  ;;  %v478_v30 = vld [vmem:[#allocation10] sm:$0xff]  ;;  %p744_p6 = scmp.ne.s32.totalorder %s1010_s19, 3 }
  0xc8   : > { %v258_v34 = vld [vmem:[#allocation2] sm:$0xf]  ;;  %v390_v41 = vadd.s32 %v389_v40, %v1069_v39  ;;  %s1107_s20 = smov (!%p744_p6), 0  }
  0xc9   : > { %v1091_v40 = vld [vmem:[%s1169_s3] sm:$0xff] (!%p744_p6) }
  0xca   : > { %vm391_vm8 = vcmp.lt.s32.totalorder %v390_v41, 500 }
  0xcb   : > { %v738_v42 = vsel %vm391_vm8, 1.0, %v968_v16 }
  0xcc   : > { %769 = vmatpush3.bf16.xpose.msra.mxu0 %v323_v19  ;;  %v424_v19 = vld [vmem:[#allocation6] sm:$0xff] }
  0xcd   : > { %770 = vmatprep.subr.bf16.mxu0 %v968_v16 }
  0xd4   : > { %771 = vmatpush3.bf16.xpose.msra.mxu0 %v326_v23 }
  0xd5   : > { %772 = vmatprep.subr.bf16.mxu0 %v968_v16 }
  0xdc   : > { %773 = vmatpush3.bf16.xpose.msra.mxu0 %v329_v25  ;;  %v457_v25 = vld [vmem:[#allocation9] sm:$0xff] }
  0xdd   : > { %774 = vmatprep.subr.bf16.mxu0 %v968_v16 }
  0xe4   : > { %775 = vmatpush3.bf16.xpose.msra.mxu0 %v332_v27 }
  0xe5   : > { %776 = vmatprep.subr.bf16.mxu0 %v968_v16 }
  0xec   : > { %777 = vmatpush3.bf16.xpose.msra.mxu0 %v335_v29 }
  0xed   : > { %778 = vmatprep.subr.bf16.mxu0 %v968_v16 }
  0xf4   : > { %779 = vmatpush3.bf16.xpose.msra.mxu0 %v338_v31 }
  0xf5   : > { %780 = vmatprep.subr.bf16.mxu0 %v968_v16 }
  0xfc   : > { %781 = vmatpush3.bf16.xpose.msra.mxu0 %v341_v33 }
 0x103   : > { %783 = vmatmul.mubr.msk.bf16.vlgmr.msra.gmra.mrb[0].mxu0 %vm315_vm5, %v258_v34 }
 0x144   : > { %v402_v36 = vpop.permute.xlu0 %401 }
 0x145   : > { %vm403_vm7 = vcmp.eq.s32.totalorder %v739_v35, %v402_v36 }
 0x146   : > { %v740_v37 = vsel %vm403_vm7, 1.0, %v968_v16 }
 0x147   : > { %415 = vst [vmem:[%s414_s11] sm:$0xff] %v740_v37  ;;  %v406_v43 = vsub.f32 %v738_v42, %v740_v37 }
 0x1d6   : > { %v377_v44 = vpop.f32.mrb[0].mxu0 }
 0x1d7   : > { %385 = vst [vmem:[%s384_s13] sm:$0xff] %v377_v44  ;;  %v444_v45 = vadd.f32 1.0, %v377_v44  ;;  %v784_v46 = vpop.f32.mrb[1].mxu0  ;;  %v418_v47 = vmul.f32 20.0, %v377_v44 }
 0x1d8   : > { %v380_v48 = vpop.f32.mrb[2].mxu0 }
 0x1d9   : > { %v785_v49 = vpop.f32.mrb[3].mxu0  ;;  %v452_v50 = vmul.f32 %v418_v47, %v406_v43  ;;  %v419_v51 = vmul.f32 %v740_v37, %v418_v47  ;;  %v476_v52 = vmul.f32 %v444_v45, %v406_v43 }
 0x1da   : > { %v1097_v49 = vmov (!%p744_p6), 0.0  }
 0x1db   : > { %454 = vmax.xlane.f32.xlu1 %v452_v50  ;;  %421 = vmax.xlane.f32.xlu0 %v419_v51  ;;  %v743_v14 = vadd.f32 -1.0, %v476_v52  ;;  %v1103_v52 = vmov (!%p744_p6), 0.0  }
 0x268   : > { %v455_v55 = vpop.xlane.xlu1 %454  ;;  %v422_v56 = vpop.xlane.xlu0 %421 }
 0x269   : > { %v456_v57 = vmax.f32 %v453_v53, %v455_v55  ;;  %v423_v58 = vmax.f32 %v420_v54, %v422_v56 }
 0x26b   : > { %v458_v59 = vsub.f32 %v453_v53, %v456_v57  ;;  %475 = vst.msk [vmem:[#allocation8] sm:$0xff] %vm441_vm9, %v456_v57  ;;  %v425_v60 = vsub.f32 %v420_v54, %v423_v58  ;;  %443 = vst.msk [vmem:[#allocation5] sm:$0xff] %vm441_vm9, %v423_v58  ;;  %431 = vperm.xlu1 %867, %v423_v58   ;;  %v1105_v53 = vmov (!%p744_p6), 0.0  }
 0x26d   : > { %v426_v15 = vmul.f32 1.442695, %v425_v60  ;;  %v459_v17 = vmul.f32 1.442695, %v458_v59 }
 0x26f   : > { %464 = vperm.xlu1 %867, %v456_v57  }
 0x273   : > { %409 = vperm.xlu1 %867, %v407_v61  }
 0x2ea   : > { %v432_v62 = vpop.permute.xlu1 %431 }
 0x2eb   : > { %v434_v63 = vsub.f32 %v419_v51, %v432_v62  ;;  %v1101_v51 = vmov (!%p744_p6), 0.0  }
 0x2ed   : > { %v435_v0 = vmul.f32 1.442695, %v434_v63 }
 0x2ee   : > { %v465_v1 = vpop.permute.xlu1 %464 }
 0x2ef   : > { %876 = vpow2.f32 %v435_v0  ;;  %v467_v2 = vsub.f32 %v452_v50, %v465_v1  ;;  %v1099_v50 = vmov (!%p744_p6), 0.0  }
 0x2f1   : > { %v468_v3 = vmul.f32 1.442695, %v467_v2 }
 0x2f2   : > { %v410_v4 = vpop.permute.xlu1 %409 }
 0x2f3   : > { %878 = vpow2.f32 %v468_v3  ;;  %vm411_vm10 = vcmp.eq.s32.totalorder %v390_v41, %v410_v4 }
 0x2f4   : > { %v741_v5 = vsel %vm411_vm10, 1.0, %v968_v16  ;;  %880 = vpow2.f32 %v426_v15 }
 0x2f5   : > { %v416_v6 = vsub.f32 1.0, %v741_v5  ;;  %882 = vpow2.f32 %v459_v17 }
 0x2f7   : > { %v417_v7 = vmul.f32 %v740_v37, %v416_v6 }
 0x2f9   : > { %v877_v8 = vpop.eup %876  ;;  %v445_v9 = vmul.f32 %v444_v45, %v417_v7  ;;  %v492_v45 = vld [vmem:[#allocation8] sm:$0xff] (!%p744_p6) }
 0x2fa   : > { %v437_v10 = vmul.f32 %v877_v8, %v738_v42 }
 0x2fb   : > { %v742_v11 = vadd.f32 -1.0, %v445_v9 }
 0x2fc   : > { %438 = vadd.xlane.f32.xlu1 %v437_v10 }
 0x2fd   : > { %v879_v12 = vpop.eup %878  ;;  %448 = vmax.xlane.f32.xlu0 %v742_v11 }
 0x2fe   : > { %v470_v13 = vmul.f32 %v879_v12, %v738_v42  ;;  %v881_v18 = vpop.eup %880  ;;  %v487_v42 = vld [vmem:[#allocation5] sm:$0xff] (!%p744_p6) }
 0x2ff   : > { %v428_v16 = vmul.f32 %v881_v18, %v424_v19  ;;  %v883_v22 = vpop.eup %882 }
 0x300   : > { %v461_v27 = vmul.f32 %v883_v22, %v457_v25 }
 0x301   : > { %471 = vadd.xlane.f32.xlu0 %v470_v13 }
 0x305   : > { %479 = vmax.xlane.f32.xlu0 %v743_v14 }
 0x389   : > { %v439_v21 = vpop.xlane.xlu1 %438 }
 0x38a   : > { %v440_v23 = vadd.f32 %v439_v21, %v428_v16  ;;  %v449_v24 = vpop.xlane.xlu0 %448 }
 0x38b   : > { %v450_v26 = vmax.f32 %v447_v20, %v449_v24 }
 0x38c   : > { %442 = vst.msk [vmem:[#allocation6] sm:$0xff] %vm441_vm9, %v440_v23 }
 0x38d   : > { %451 = vst.msk [vmem:[#allocation7] sm:$0xff] %vm441_vm9, %v450_v26 }
 0x38e   : > { %v472_v28 = vpop.xlane.xlu0 %471 }
 0x38f   : > { %v473_v29 = vadd.f32 %v472_v28, %v461_v27  ;;  %486 = sbr.rel (%p744_p6) target bundleno = 1458 (0x5b2), region = 48 }
 0x391   : > { %474 = vst.msk [vmem:[#allocation9] sm:$0xff] %vm441_vm9, %v473_v29 }
 0x392   : > { %v480_v31 = vpop.xlane.xlu0 %479 }
 0x393   : > { %v481_v32 = vmax.f32 %v478_v30, %v480_v31  ;;  %v488_v33 = vld [vmem:[#allocation6] sm:$0xff] (!%p744_p6) }
 0x394   : > { %884 = vlog2.f32 (!%p744_p6), %v488_v33  ;;  %v497_v35 = vld [vmem:[#allocation7] sm:$0xff] (!%p744_p6) }
 0x395   : > { %482 = vst.msk [vmem:[#allocation10] sm:$0xff] %vm441_vm9, %v481_v32  ;;  %v1084_v37 = vmul.f32 (!%p744_p6), 0.9, %v497_v35 }
 0x398   : > { %v493_v34 = vld [vmem:[#allocation9] sm:$0xff] }
 0x399   : > { %886 = vlog2.f32 %v493_v34 }
 0x39c   : > { %v499_v36 = vld [vmem:[#allocation10] sm:$0xff] }
 0x39d   : > { %v1086_v38 = vmul.f32 0.9, %v499_v36 }
 0x39e   : > { %v885_v41 = vpop.eup %884 }
 0x39f   : > { %v490_v44 = vmul.f32 0.6931472, %v885_v41 }
 0x3a1   : > { %v1093_v47 = vadd.f32 %v490_v44, %v487_v42 }
 0x3a3   : > { %v887_v43 = vpop.eup %886 }
 0x3a4   : > { %v495_v46 = vmul.f32 0.6931472, %v887_v43 }
 0x3a6   : > { %v1095_v48 = vadd.f32 %v495_v46, %v492_v45 }
 0x3a7 LB: >> { %v971_v54 = vmov 0   ;;  %s746_s21 = sshll.u32 %s964_s20, 7  ;;  %s745_s22 = sshll.u32 %s964_s20, 3  ;;  %v972_v59 = vmov 0.0   ;;  %s964_s20 = sphi %s1107_s20, %s507_s20   ;;  %v960_v53 = vphi %v1105_v53, %v1176_v53   ;;  %v956_v52 = vphi %v1103_v52, %v1175_v52   ;;  %v952_v51 = vphi %v1101_v51, %v1174_v51   ;;  %v948_v50 = vphi %v1099_v50, %v1173_v50   ;;  %v944_v49 = vphi %v1097_v49, %v1172_v49  }
 0x3a8   : >> { %888 = vset.pattern.permute.xlu0 %v971_v54  ;;  %889 = vset.pattern.permute.xlu1 %v971_v54  ;;  %v519_v55 = vstv %s746_s21  ;;  %s516_s23 = scalar_lea.vmem [#allocation4], %s745_s22  ;;  %s514_s24 = scalar_lea.vmem [#allocation3], %s745_s22 }
 0x3a9   : >> { %525 = vperm.xlu0 %888, %v1091_v40   ;;  %577 = vperm.xlu1 %889, %v1095_v48   ;;  %v520_v56 = vadd.s32 %v519_v55, %v1069_v39  ;;  %v517_v57 = vld [vmem:[%s516_s23] sm:$0xff]  ;;  %s507_s20 = sadd.s32 1, %s964_s20  }
 0x3aa   : >> { %v515_v58 = vld [vmem:[%s514_s24] sm:$0xff]  ;;  %p504_p7 = scmp.ge.s32.totalorder %s507_s20, 4  }
 0x3ab   : >> { %vm521_vm11 = vcmp.lt.s32.totalorder %v520_v56, 500  ;;  %v544_v62 = vmul.f32 20.0, %v515_v58  ;;  %v531_v63 = vadd.f32 1.0, %v515_v58 }
 0x3ac   : >> { %v747_v60 = vsel %vm521_vm11, 1.0, %v972_v59 }
 0x3ad   : >> { %548 = vperm.xlu0 %888, %v1093_v47   ;;  %538 = vperm.xlu1 %889, %v1084_v37   ;;  %v530_v61 = vsub.f32 %v747_v60, %v517_v57  ;;  %v545_v2 = vmul.f32 %v544_v62, %v517_v57 }
 0x3af   : >> { %v574_v1 = vmul.f32 %v544_v62, %v530_v61  ;;  %v564_v3 = vmul.f32 %v531_v63, %v530_v61 }
 0x3b1   : >> { %568 = vperm.xlu0 %888, %v1086_v38   ;;  %v751_v11 = vadd.f32 -1.0, %v564_v3 }
 0x428   : >> { %v526_v0 = vpop.permute.xlu0 %525  ;;  %v578_v6 = vpop.permute.xlu1 %577 }
 0x429   : >> { %vm527_vm12 = vcmp.eq.s32.totalorder %v520_v56, %v526_v0  ;;  %v580_v9 = vsub.f32 %v574_v1, %v578_v6 }
 0x42a   : >> { %v748_v4 = vsel %vm527_vm12, 1.0, %v972_v59 }
 0x42b   : >> { %v532_v5 = vsub.f32 1.0, %v748_v4  ;;  %v581_v15 = vmax.f32 %v580_v9, -18.420681 }
 0x42c   : >> { %v549_v7 = vpop.permute.xlu0 %548  ;;  %v539_v19 = vpop.permute.xlu1 %538 }
 0x42d   : >> { %v533_v8 = vmul.f32 %v532_v5, %v517_v57  ;;  %v551_v10 = vsub.f32 %v545_v2, %v549_v7 }
 0x42f   : >> { %v552_v12 = vmax.f32 %v551_v10, -18.420681  ;;  %v534_v13 = vmul.f32 %v533_v8, %v531_v63 }
 0x430   : >> { %v569_v14 = vpop.permute.xlu0 %568 }
 0x431   : >> { %v749_v17 = vadd.f32 -1.0, %v534_v13  ;;  %vm571_vm13 = vcmp.gt.f32.partialorder %v751_v11, %v569_v14  ;;  %v553_v18 = vmul.f32 %v748_v4, %v552_v12 }
 0x432   : >> { %v752_v16 = vsel %vm571_vm13, 1.0, %v972_v59 }
 0x433   : >> { %vm541_vm14 = vcmp.gt.f32.partialorder %v749_v17, %v539_v19  ;;  %554 = vadd.xlane.f32.xlu1 %v553_v18  ;;  %v582_v21 = vmul.f32 %v752_v16, %v581_v15 }
 0x434   : >> { %v750_v20 = vsel %vm541_vm14, 1.0, %v972_v59 }
 0x435   : >> { %561 = vadd.xlane.f32.xlu0 %v750_v20  ;;  %v557_v22 = vmul.f32 %v750_v20, %v552_v12 }
 0x437   : >> { %583 = vadd.xlane.f32.xlu1 %v582_v21 }
 0x439   : >> { %558 = vadd.xlane.f32.xlu0 %v557_v22 }
 0x43d   : >> { %586 = vadd.xlane.f32.xlu0 %v752_v16 }
 0x4c0   : >> { %v555_v23 = vpop.xlane.xlu1 %554 }
 0x4c1   : >> { %v556_v24 = vadd.f32 %v960_v53, %v555_v23  }
 0x4c2   : >> { %v562_v25 = vpop.xlane.xlu0 %561 }
 0x4c3   : >> { %v563_v26 = vadd.f32 %v952_v51, %v562_v25   ;;  %v1176_v53 = vmov %v556_v24  ;;  %v589_v33 = vsel (%p504_p7), %vm441_vm9, %v556_v24, 0.0 }
 0x4c4   : >> { %v584_v27 = vpop.xlane.xlu1 %583  ;;  %590 = vadd.xlane.f32.xlu0 (%p504_p7), %v589_v33 }
 0x4c5   : >> { %v585_v28 = vadd.f32 %v948_v50, %v584_v27   ;;  %v1174_v51 = vmov %v563_v26  ;;  %v603_v35 = vadd.f32 (%p504_p7), 1.0, %v563_v26 }
 0x4c6   : >> { %v559_v29 = vpop.xlane.xlu0 %558 }
 0x4c7   : >> { %v560_v30 = vadd.f32 %v956_v52, %v559_v29   ;;  %v1173_v50 = vmov %v585_v28  ;;  %506 = sbr.rel (!%p504_p7) target bundleno = 935 (0x3a7), region = 92 }
 0x4c9   : >> { %v1175_v52 = vmov %v560_v30 }
 0x4ca   : >> { %v587_v31 = vpop.xlane.xlu0 %586 }
 0x4cb   : >> { %v588_v32 = vadd.f32 %v944_v49, %v587_v31  }
 0x4cd   : >> { %v1172_v49 = vmov %v588_v32  ;;  %v620_v34 = vadd.f32 (%p504_p7), 1.0, %v588_v32 }
 0x4cf   : > { %890 = vrcp.f32 %v620_v34 }
 0x4d0   : > { %892 = vrcp.f32 %v603_v35 }
 0x4d9   : > { %v891_v36 = vpop.eup %890 }
 0x4da   : > { %v893_v41 = vpop.eup %892  ;;  %v622_v42 = vmul.f32 %v891_v36, %v585_v28 }
 0x4db   : > { %v605_v43 = vmul.f32 %v893_v41, %v560_v30 }
 0x4dc   : > { %v623_v44 = vsel %vm441_vm9, %v622_v42, 0.0 }
 0x4dd   : > { %624 = vadd.xlane.f32.xlu1 %v623_v44  ;;  %v606_v45 = vsel %vm441_vm9, %v605_v43, 0.0 }
 0x4de   : > { %607 = vadd.xlane.f32.xlu0 %v606_v45 }
 0x551   : > { %v591_v46 = vpop.xlane.xlu0 %590 }
 0x552   : > { %v592_v53 = vrot.slane %v591_v46, 4 }
 0x554   : > { %v593_v54 = vadd.f32 %v592_v53, %v591_v46 }
 0x556   : > { %v594_v39 = vrot.slane %v593_v54, 2 }
 0x558   : > { %v595_v37 = vadd.f32 %v594_v39, %v593_v54 }
 0x55a   : > { %v596_v38 = vrot.slane %v595_v37, 1 }
 0x55c   : > { %v597_v40 = vadd.f32 %v596_v38, %v595_v37 }
 0x55e   : > { %786 = vpush %v597_v40 }
 0x56a   : > { %v625_v47 = vpop.xlane.xlu1 %624 }
 0x56b   : > { %v626_v48 = vrot.slane %v625_v47, 4  ;;  %v608_v49 = vpop.xlane.xlu0 %607 }
 0x56c   : > { %v609_v50 = vrot.slane %v608_v49, 4 }
 0x56d   : > { %v627_v51 = vadd.f32 %v626_v48, %v625_v47 }
 0x56e   : > { %v610_v52 = vadd.f32 %v609_v50, %v608_v49 }
 0x56f   : > { %v628_v55 = vrot.slane %v627_v51, 2 }
 0x570   : > { %v611_v56 = vrot.slane %v610_v52, 2 }
 0x571   : > { %v629_v57 = vadd.f32 %v628_v55, %v627_v51 }
 0x572   : > { %v612_v58 = vadd.f32 %v611_v56, %v610_v52 }
 0x573   : > { %v630_v59 = vrot.slane %v629_v57, 1 }
 0x574   : > { %v613_v60 = vrot.slane %v612_v58, 1 }
 0x575   : > { %v631_v61 = vadd.f32 %v630_v59, %v629_v57 }
 0x576   : > { %v614_v62 = vadd.f32 %v613_v60, %v612_v58 }
 0x578   : > { %788 = vpush %v614_v62 }
 0x579   : > { %790 = vpush %v631_v61 }
 0x58f   : > { %s787_s25 = spop %786 }
 0x590   : > { %s599_s26 = ssub.f32 0.0, %s787_s25 }
 0x592   : > { %s600_s27 = smul.f32 0.125, %s599_s26 }
 0x594   : > { %602 = sst [smem:[#allocation11]] %s600_s27 }
 0x5a9   : > { %s789_s28 = spop %788 }
 0x5aa   : > { %s616_s29 = ssub.f32 0.0, %s789_s28  ;;  %s791_s30 = spop %790 }
 0x5ab   : > { %s633_s6 = ssub.f32 0.0, %s791_s30 }
 0x5ac   : > { %s617_s7 = smul.f32 0.125, %s616_s29 }
 0x5ad   : > { %s634_s8 = smul.f32 0.125, %s633_s6 }
 0x5ae   : > { %619 = sst [smem:[#allocation11 + $0x1]] %s617_s7 }
 0x5af   : > { %s635_s9 = smul.f32 0.6, %s634_s8 }
 0x5b1   : > { %637 = sst [smem:[#allocation11 + $0x2]] %s635_s9 }
 0x5b2 PF: > { %p796_p8 = scmp.eq.s32.totalorder %s1010_s19, 3  ;;  %s894_s12 = scalar_lea.hbm %s1171_s5, 16 }
 0x5b3   : > { %p895_p9 = scmp.ne.s32.totalorder %s1171_s5, %s894_s12  ;;  %p900_p12 = scmp.lt.u32.totalorder %s894_s12, %s1171_s5 }
 0x5b5   : > { %p896_p10 = pnand %p895_p9, %p796_p8 }
 0x5b7   : > { %p897_p11 = pneg %p896_p10 }
 0x5b9   : > { %p902_p13 = pnand %p900_p12, %p897_p11 }
 0x5bb   : > { %905 = shalt.err (!%p902_p13)
}
 0x5bc   : > { %s973_s17 = smov [#allocation11]  }
 0x5bd   : > { %793 = dma.smem_to_hbm (%p796_p8), %s973_s17, 16, %s1171_s5, [#allocation12]  }
 0x5be   : > { %935 = dma.done.wait (%p796_p8), [#allocation12], 16  }
 0x5bf   : > { %937 = vsyncadd (%p796_p8), [#allocation12], 4294967280 }
 0x5c0   : > { %651 = sfence }
 0x5c1 PF: > { %s16_s18 = sadd.s32 1, %s940_s18  }
 0x5c2   : > { %p13_p0 = scmp.ge.s32.totalorder %s16_s18, 6  }
 0x5c4   :  { %15 = sbr.rel (!%p13_p0) target bundleno = 1 (0x1), region = 103 }
 0x5cb   :  { %657 = vsyncpa [#allocation12], 1 }
 0x5cc   :  { %659 = vsyncpa [#allocation12 + $0x1], 1 }

</bundles_post_ra>
